<compile_context>
chip_gen: v7x
topology: tpu7x:2x2x1
jax: 0.10.0
libtpu: 0.0.40
codegen_flags: <defaults>
</compile_context>

<pallas_src>
import jax
import jax.numpy as jnp
from jax.experimental import pallas as pl
from jax.experimental.pallas import tpu as pltpu


def _dma_copy_kernel(src_ref, dst_ref, sem):
    # Whole-array HBM -> HBM DMA (identity copy); no VMEM staging, no grid.
    cp = pltpu.make_async_copy(src_ref, dst_ref, sem)
    cp.start()
    cp.wait()


def _materialize_copy(w):
    """Fresh copy of `w` via a single whole-array HBM->HBM DMA."""
    nbytes = w.size * w.dtype.itemsize
    return pl.pallas_call(
        _dma_copy_kernel,
        out_shape=jax.ShapeDtypeStruct(w.shape, w.dtype),
        in_specs=[pl.BlockSpec(memory_space=pl.ANY)],
        out_specs=pl.BlockSpec(memory_space=pl.ANY),
        scratch_shapes=[pltpu.SemaphoreType.DMA],
        cost_estimate=pl.CostEstimate(
            flops=0, transcendentals=0, bytes_accessed=2 * nbytes),
    )(w)


class Helper:
    """JAX/Pallas port of warphead.models.encoders.Helper.

    helper_weights is passed in-memory (synthetic in __main__); the original
    module would os.path.exists() + torch.load() it from a file path.
    """

    def __init__(self, helper_weights=None):
        # TODO(synk): original checks os.path.exists + torch.load()s a file;
        # we take an in-memory array (or None) instead of reading files.
        self.helper_weights = helper_weights

    def forward(self, materialize=False):
        if self.helper_weights is None:
            return None
        w = self.helper_weights
        if not materialize:
            # Pass-through: identical semantics to the PyTorch module —
            # no HBM read/write, no kernel-launch overhead.
            return w
        # Explicit materialization: one whole-array HBM->HBM DMA.
        # (No input_output_aliases: donating the stored buffer would
        # invalidate self.helper_weights for subsequent calls.)
        return _materialize_copy(w)

    __call__ = forward


if __name__ == "__main__":
    key = jax.random.PRNGKey(0)
    # Small synthetic helper features, NCHW-like: [batch=2, channels=4, 16, 16]
    helper_weights = jax.random.normal(key, (2, 4, 16, 16), dtype=jnp.float32)

    module = Helper(helper_weights=helper_weights)

    # Default forward: pure pass-through (matches `return self.helper_weights`).
    out_fast = jax.block_until_ready(module())
    assert out_fast.shape == helper_weights.shape
    assert out_fast.dtype == helper_weights.dtype
    assert bool(jnp.array_equal(out_fast, helper_weights, equal_nan=True))

    # Materializing path: run the whole-array DMA copy kernel once and verify.
    out_kernel = jax.block_until_ready(module(materialize=True))
    assert out_kernel.shape == helper_weights.shape
    assert out_kernel.dtype == helper_weights.dtype
    assert bool(jnp.array_equal(out_kernel, helper_weights, equal_nan=True))

    # "No weights" path returns None, matching PyTorch.
    assert Helper(None)() is None

    print("KERNEL_OK")
</pallas_src>

<mosaic_0001>
module attributes {stable_mosaic.version = 11 : i64} {
  func.func @_dma_copy_kernel(%arg0: memref<2x4x16x16xf32, #tpu.memory_space<any>>, %arg1: memref<2x4x16x16xf32, #tpu.memory_space<any>>, %arg2: memref<!tpu.dma_semaphore, #tpu.memory_space<semaphore_mem>>) attributes {dimension_semantics = [], scalar_prefetch = 0 : i64, scratch_operands = 1 : i64, tpu.core_type = #tpu.core_type<tc>} {
    tpu.enqueue_dma source(%arg0 : memref<2x4x16x16xf32, #tpu.memory_space<any>>) target(%arg1 : memref<2x4x16x16xf32, #tpu.memory_space<any>>) target_semaphore(%arg2 : memref<!tpu.dma_semaphore, #tpu.memory_space<semaphore_mem>>)
    tpu.wait_dma2 semaphore(%arg2 : memref<!tpu.dma_semaphore, #tpu.memory_space<semaphore_mem>>) src(%arg0 : memref<2x4x16x16xf32, #tpu.memory_space<any>>) dst(%arg1 : memref<2x4x16x16xf32, #tpu.memory_space<any>>)
    return
  }
}

</mosaic_0001>

<bundles_post_ra>
// kernel: tpu_custom_call.1
= control target key start
LH: loop header
LB: loop body
LE: loop exit
PB: predicated region body
PF: predicated region fallthrough
CT: control target
= control target key end

     0   :  { %s36_s6 = smov [#allocation2]   ;;  %s37_s7 = smov [#allocation3]   ;;  %s55_s0 = inlined_call_operand.hbm [shape: f32[2,4,16,16], index: 0, kind: input, shape index: {}]   ;;  %s56_s1 = inlined_call_operand.hbm [shape: f32[2,4,16,16], index: 1, kind: output, shape index: {}]  }
   0x1   :  { %s38_s8 = smov 0  }
   0x2   :  { %18 = dma.general %s55_s0, 2048, %s56_s1, %s36_s6, %s37_s7, [#allocation4], %s38_s8, 0  }
   0x3   :  { %34 = dma.done.wait [#allocation2], 2048 }
   0x4   :  { %35 = vsyncadd [#allocation2], 4294965248 }
   0x5   :  { %24 = vsyncmov [#allocation2] }
   0x8   :  { %s25_s13 = vpop.sfrf %24 }
   0x9   :  { %p30_p0 = scmp.ne.s32.totalorder %s25_s13, 0 }
   0xb   :  { %29 = shalt.err (%p30_p0)  }

</bundles_post_ra>
